<compile_context>
chip_gen: v6e
topology: v6e:2x2x1
jax: 0.10.0
libtpu: 0.0.40
codegen_flags: <defaults>
</compile_context>

<pallas_src>
import jax
import jax.numpy as jnp
from jax import lax
from jax.experimental import pallas as pl
from jax.experimental.pallas import tpu as pltpu
import numpy as np

# ---- small config (consistent with the module's forward) -------------------
B = 2                       # batch size
N_ITEMS = 8                 # item corpus size (torch comment: 10)
BERT_OUT = 16               # bert_out_dim (torch comment: 50)
D_IN = 2 * BERT_OUT         # proj input dim (= 32)
HID = 32                    # DeepShare_user_hidden_dims[1] == user_intent dim
SEARCH_NUM = 3              # DeepShare_search_num
T_OUT = 1 + SEARCH_NUM      # output sequence length (= 4)

# packed activation block: [ui rows (padded to one sublane tile); item rows]
ACT_PAD = 8                                   # ui rows padded to a full sublane tile
ACT_ROWS = ACT_PAD + B * N_ITEMS              # 24
# packed weight block (sublane-aligned sections):
#   rows [0:D_IN),  lanes [0:HID)     -> w_proj
#   row  D_IN,      lanes [0:HID)     -> b_proj
#   rows [W_TS_ROW:W_TS_ROW+HID), :   -> [w_t | w_s]
W_TS_ROW = ((D_IN + 1 + 7) // 8) * 8          # 40 (sublane-aligned)
W_ROWS = W_TS_ROW + HID                       # 72
W_COLS = 2 * HID                              # 64


def attn_greedy_kernel(act_ref, w_ref, out_ref):
    # act_ref : (ACT_ROWS, D_IN)   rows [0:B]=user_intent, rows [ACT_PAD:]=items (batch folded)
    # w_ref   : (W_ROWS, W_COLS)   packed parameters (see layout above)
    # out_ref : (B, T_OUT*HID)     lane-dense output, single unmasked store
    acts = act_ref[...]                                        # (24, 32)
    w_proj64 = w_ref[pl.ds(0, D_IN), :]                        # (32, 64)  [w_proj | 0]
    bias64 = w_ref[pl.ds(D_IN, 1), :]                          # (1, 64)   [b_proj | 0]
    w_ts = w_ref[pl.ds(W_TS_ROW, HID), :]                      # (32, 64)  [w_t | w_s]

    # ---- prologue: two MXU matmuls cover the whole batch --------------------
    proj64 = jnp.dot(acts, w_proj64,
                     preferred_element_type=jnp.float32) + bias64          # (24, 64)
    proj = proj64[:, 0:HID]                                                # items (+ ui junk)

    acts_h = acts[:, 0:HID]
    row_id = lax.broadcasted_iota(jnp.int32, (ACT_ROWS, HID), 0)
    lhs2 = jnp.where(row_id < ACT_PAD, acts_h, proj)    # rows: [ui ; items], VPU select only
    big = jnp.dot(lhs2, w_ts, preferred_element_type=jnp.float32)          # (24, 64)

    ui = acts_h[0:B, :]                                                    # (B, H)
    ui_ws = big[0:B, HID:2 * HID]                                          # ui @ w_s
    tgt = jnp.tanh(big[ACT_PAD:, 0:HID]).reshape(B, N_ITEMS, HID)          # tanh(items @ w_t)
    # lane-concat [item | item@w_s] once so one masked reduce gathers both
    items_cat = jnp.concatenate(
        [proj[ACT_PAD:, :], big[ACT_PAD:, HID:2 * HID]],
        axis=1).reshape(B, N_ITEMS, 2 * HID)                               # (B, N, 2H)

    iota_n = lax.broadcasted_iota(jnp.int32, (B, N_ITEMS, 1), 1).astype(jnp.float32)
    n_fill = jnp.float32(N_ITEMS)

    acc_ws = ui_ws                      # running sum of w_s-projected intent rows
    out_chunks = [ui]                   # lane-dense output assembled at the end
    for i in range(SEARCH_NUM):         # unrolled; MXU-free serial chain
        # tanh(mean(intent) @ w_s) == tanh((sum of projected rows) / count)
        s = jnp.tanh(acc_ws * jnp.float32(1.0 / (i + 1)))                  # (B, H)
        # attention scores; softmax dropped (argmax(softmax(x)) == argmax(x))
        scores = jnp.sum(tgt * s[:, None, :], axis=2, keepdims=True)       # (B, N, 1)
        smax = jnp.max(scores, axis=1, keepdims=True)                      # (B, 1, 1)
        idx = jnp.min(jnp.where(scores == smax, iota_n, n_fill),
                      axis=1, keepdims=True)                               # lowest-index tie-break
        sel = iota_n == idx                                                # (B, N, 1)
        # one masked sublane reduce gathers both the item and its w_s projection
        picked = jnp.sum(jnp.where(sel, items_cat, 0.0), axis=1)           # (B, 2H)
        out_chunks.append(picked[:, 0:HID])
        acc_ws = acc_ws + picked[:, HID:2 * HID]

    out_ref[...] = jnp.concatenate(out_chunks, axis=1)                     # (B, 128), one store


def pack_weights(w_proj, b_proj, w_t, w_s):
    """One-time parameter packing (outside the hot path) into a single block."""
    w = jnp.zeros((W_ROWS, W_COLS), jnp.float32)
    w = w.at[0:D_IN, 0:HID].set(w_proj.astype(jnp.float32))
    w = w.at[D_IN, 0:HID].set(b_proj.reshape(HID).astype(jnp.float32))
    w = w.at[W_TS_ROW:W_TS_ROW + HID, 0:HID].set(w_t.astype(jnp.float32))
    w = w.at[W_TS_ROW:W_TS_ROW + HID, HID:2 * HID].set(w_s.astype(jnp.float32))
    return w


def pack_activations(user_intent, item_corpus):
    """Pack user_intent + item_corpus into one block -> a single input DMA."""
    ui_pad = jnp.pad(user_intent.astype(jnp.float32),
                     ((0, ACT_PAD - B), (0, D_IN - HID)))
    ic2d = item_corpus.reshape(B * N_ITEMS, D_IN).astype(jnp.float32)
    return jnp.concatenate([ui_pad, ic2d], axis=0)              # (ACT_ROWS, D_IN)


def attn_greedy_search(user_intent, item_corpus, w_packed):
    acts = pack_activations(user_intent, item_corpus)
    out2d = pl.pallas_call(
        attn_greedy_kernel,
        out_shape=jax.ShapeDtypeStruct((B, T_OUT * HID), jnp.float32),
        grid_spec=pltpu.PrefetchScalarGridSpec(
            num_scalar_prefetch=0,
            grid=(1,),                               # whole forward in one grid step
            in_specs=[
                pl.BlockSpec((ACT_ROWS, D_IN), lambda i: (0, 0)),
                pl.BlockSpec((W_ROWS, W_COLS), lambda i: (0, 0)),
            ],
            out_specs=pl.BlockSpec((B, T_OUT * HID), lambda i: (0, 0)),
        ),
        compiler_params=pltpu.CompilerParams(
            dimension_semantics=("arbitrary",)),
    )(acts, w_packed)
    return out2d.reshape(B, T_OUT, HID)


# ---- pure-JAX reference (mirrors the PyTorch forward) ----------------------
def reference_forward(user_intent, item_corpus, w_proj, b_proj, w_t, w_s):
    item = item_corpus @ w_proj + b_proj          # proj            [B, N, H]
    intent = user_intent[:, None, :]              # unsqueeze(1)    [B, 1, H]
    for _ in range(SEARCH_NUM):
        src = jnp.mean(intent, axis=1, keepdims=True)                # [B,1,H]
        tgt = jnp.tanh(item @ w_t)                                   # [B,N,H]
        s = jnp.tanh(src @ w_s)                                      # [B,1,H]
        scores = jnp.einsum('bnh,bkh->bnk', tgt, s)[..., 0]          # [B,N]
        probs = jax.nn.softmax(scores, axis=1)
        idx = jnp.argmax(probs, axis=1)                              # [B]
        item_vec = item[jnp.arange(B), idx][:, None, :]              # [B,1,H]
        intent = jnp.concatenate([intent, item_vec], axis=1)
    return intent


if __name__ == "__main__":
    key = jax.random.PRNGKey(0)
    k_ui, k_ic, k_wp, k_bp, k_wt, k_ws = jax.random.split(key, 6)

    # deterministic synthetic inputs / parameters
    user_intent = jax.random.normal(k_ui, (B, HID), dtype=jnp.float32)
    item_corpus = jax.random.normal(k_ic, (B, N_ITEMS, D_IN), dtype=jnp.float32)

    w_proj = jax.random.normal(k_wp, (D_IN, HID), dtype=jnp.float32) * (1.0 / np.sqrt(D_IN))
    b_proj = jax.random.normal(k_bp, (1, HID), dtype=jnp.float32) * 0.1
    w_t = jax.random.normal(k_wt, (HID, HID), dtype=jnp.float32) * (1.0 / np.sqrt(HID))
    w_s = jax.random.normal(k_ws, (HID, HID), dtype=jnp.float32) * (1.0 / np.sqrt(HID))

    w_packed = jax.block_until_ready(pack_weights(w_proj, b_proj, w_t, w_s))

    out = attn_greedy_search(user_intent, item_corpus, w_packed)
    out = jax.block_until_ready(out)

    ref = reference_forward(user_intent, item_corpus, w_proj, b_proj[0], w_t, w_s)
    ref = jax.block_until_ready(ref)

    np.testing.assert_allclose(np.asarray(out), np.asarray(ref),
                               rtol=1e-5, atol=1e-5)
    print("KERNEL_OK")
</pallas_src>

<mosaic_0001>
module attributes {stable_mosaic.version = 11 : i64} {
  func.func @attn_greedy_kernel(%arg0: i32, %arg1: memref<24x32xf32, #tpu.memory_space<vmem>>, %arg2: memref<72x64xf32, #tpu.memory_space<vmem>>, %arg3: memref<2x128xf32, #tpu.memory_space<vmem>>) attributes {dimension_semantics = [#tpu.dimension_semantics<arbitrary>], iteration_bounds = array<i64: 1>, scalar_prefetch = 0 : i64, scratch_operands = 0 : i64, tpu.core_type = #tpu.core_type<tc>, window_params = [{pipeline_mode = #tpu.pipeline_mode<synchronous>, transform_indices = @transform_0, window_bounds = array<i64: 24, 32>}, {pipeline_mode = #tpu.pipeline_mode<synchronous>, transform_indices = @transform_1, window_bounds = array<i64: 72, 64>}, {pipeline_mode = #tpu.pipeline_mode<synchronous>, transform_indices = @transform_2, window_bounds = array<i64: 2, 128>}]} {
    %c0 = arith.constant 0 : index
    %c0_0 = arith.constant 0 : index
    %0 = vector.load %arg1[%c0, %c0_0] : memref<24x32xf32, #tpu.memory_space<vmem>>, vector<24x32xf32>
    %c0_1 = arith.constant 0 : index
    %c0_2 = arith.constant 0 : index
    %1 = vector.load %arg2[%c0_1, %c0_2] : memref<72x64xf32, #tpu.memory_space<vmem>>, vector<32x64xf32>
    %c32 = arith.constant 32 : index
    %c0_3 = arith.constant 0 : index
    %2 = vector.load %arg2[%c32, %c0_3] : memref<72x64xf32, #tpu.memory_space<vmem>>, vector<1x64xf32>
    %c40 = arith.constant 40 : index
    %c0_4 = arith.constant 0 : index
    %3 = vector.load %arg2[%c40, %c0_4] : memref<72x64xf32, #tpu.memory_space<vmem>>, vector<32x64xf32>
    %cst = arith.constant dense<0.000000e+00> : vector<24x64xf32>
    %4 = tpu.matmul %0, %1, %cst {dimension_numbers = #tpu.dot_dimension_numbers<[1], [0], [0], [1], [0, 0, 1, 1], [], []>} : vector<24x32xf32>, vector<32x64xf32>, vector<24x64xf32> -> vector<24x64xf32>
    %5 = vector.broadcast %2 : vector<1x64xf32> to vector<24x64xf32>
    %6 = arith.addf %4, %5 : vector<24x64xf32>
    %7 = vector.extract_strided_slice %6 {offsets = [0, 0], sizes = [24, 32], strides = [1, 1]} : vector<24x64xf32> to vector<24x32xf32>
    %8 = tpu.iota {dimensions = array<i32: 0>} : vector<24x32xi32>
    %c8_i32 = arith.constant 8 : i32
    %9 = vector.broadcast %c8_i32 : i32 to vector<24x32xi32>
    %10 = arith.cmpi slt, %8, %9 : vector<24x32xi32>
    %11 = arith.select %10, %0, %7 : vector<24x32xi1>, vector<24x32xf32>
    %cst_5 = arith.constant dense<0.000000e+00> : vector<24x64xf32>
    %12 = tpu.matmul %11, %3, %cst_5 {dimension_numbers = #tpu.dot_dimension_numbers<[1], [0], [0], [1], [0, 0, 1, 1], [], []>} : vector<24x32xf32>, vector<32x64xf32>, vector<24x64xf32> -> vector<24x64xf32>
    %13 = vector.extract_strided_slice %0 {offsets = [0, 0], sizes = [2, 32], strides = [1, 1]} : vector<24x32xf32> to vector<2x32xf32>
    %14 = vector.extract_strided_slice %12 {offsets = [0, 32], sizes = [2, 32], strides = [1, 1]} : vector<24x64xf32> to vector<2x32xf32>
    %15 = vector.extract_strided_slice %12 {offsets = [8, 0], sizes = [16, 32], strides = [1, 1]} : vector<24x64xf32> to vector<16x32xf32>
    %16 = math.tanh %15 : vector<16x32xf32>
    %17 = vector.shape_cast %16 : vector<16x32xf32> to vector<2x8x32xf32>
    %18 = vector.extract_strided_slice %7 {offsets = [8, 0], sizes = [16, 32], strides = [1, 1]} : vector<24x32xf32> to vector<16x32xf32>
    %19 = vector.extract_strided_slice %12 {offsets = [8, 32], sizes = [16, 32], strides = [1, 1]} : vector<24x64xf32> to vector<16x32xf32>
    %20 = tpu.concatenate %18, %19 in 1 : vector<16x32xf32>, vector<16x32xf32> -> vector<16x64xf32>
    %21 = vector.shape_cast %20 : vector<16x64xf32> to vector<2x8x64xf32>
    %22 = tpu.iota {dimensions = array<i32: 1>} : vector<2x8x1xi32>
    %23 = arith.sitofp %22 : vector<2x8x1xi32> to vector<2x8x1xf32>
    %cst_6 = arith.constant 1.000000e+00 : f32
    %24 = vector.broadcast %cst_6 : f32 to vector<2x32xf32>
    %25 = arith.mulf %14, %24 : vector<2x32xf32>
    %26 = math.tanh %25 : vector<2x32xf32>
    %27 = vector.shape_cast %26 : vector<2x32xf32> to vector<2x1x32xf32>
    %28 = vector.broadcast %27 : vector<2x1x32xf32> to vector<2x8x32xf32>
    %29 = arith.mulf %17, %28 : vector<2x8x32xf32>
    %cst_7 = arith.constant dense<0.000000e+00> : vector<2x8xf32>
    %30 = vector.multi_reduction <add>, %29, %cst_7 [2] : vector<2x8x32xf32> to vector<2x8xf32>
    %31 = vector.shape_cast %30 : vector<2x8xf32> to vector<2x8x1xf32>
    %cst_8 = arith.constant dense<0xFF800000> : vector<2x1xf32>
    %32 = vector.multi_reduction <maximumf>, %31, %cst_8 [1] : vector<2x8x1xf32> to vector<2x1xf32>
    %33 = vector.shape_cast %32 : vector<2x1xf32> to vector<2x1x1xf32>
    %34 = vector.broadcast %33 : vector<2x1x1xf32> to vector<2x8x1xf32>
    %35 = arith.cmpf oeq, %31, %34 : vector<2x8x1xf32>
    %cst_9 = arith.constant 8.000000e+00 : f32
    %36 = vector.broadcast %cst_9 : f32 to vector<2x8x1xf32>
    %37 = arith.select %35, %23, %36 : vector<2x8x1xi1>, vector<2x8x1xf32>
    %cst_10 = arith.constant dense<0x7F800000> : vector<2x1xf32>
    %38 = vector.multi_reduction <minimumf>, %37, %cst_10 [1] : vector<2x8x1xf32> to vector<2x1xf32>
    %39 = vector.shape_cast %38 : vector<2x1xf32> to vector<2x1x1xf32>
    %40 = vector.broadcast %39 : vector<2x1x1xf32> to vector<2x8x1xf32>
    %41 = arith.cmpf oeq, %23, %40 : vector<2x8x1xf32>
    %cst_11 = arith.constant 0.000000e+00 : f32
    %42 = vector.shape_cast %41 : vector<2x8x1xi1> to vector<2x8x1xi1>
    %43 = vector.broadcast %42 : vector<2x8x1xi1> to vector<2x8x64xi1>
    %44 = vector.broadcast %cst_11 : f32 to vector<2x8x64xf32>
    %45 = arith.select %43, %21, %44 : vector<2x8x64xi1>, vector<2x8x64xf32>
    %cst_12 = arith.constant dense<0.000000e+00> : vector<2x64xf32>
    %46 = vector.multi_reduction <add>, %45, %cst_12 [1] : vector<2x8x64xf32> to vector<2x64xf32>
    %47 = vector.extract_strided_slice %46 {offsets = [0, 0], sizes = [2, 32], strides = [1, 1]} : vector<2x64xf32> to vector<2x32xf32>
    %48 = vector.extract_strided_slice %46 {offsets = [0, 32], sizes = [2, 32], strides = [1, 1]} : vector<2x64xf32> to vector<2x32xf32>
    %49 = arith.addf %14, %48 : vector<2x32xf32>
    %cst_13 = arith.constant 5.000000e-01 : f32
    %50 = vector.broadcast %cst_13 : f32 to vector<2x32xf32>
    %51 = arith.mulf %49, %50 : vector<2x32xf32>
    %52 = math.tanh %51 : vector<2x32xf32>
    %53 = vector.shape_cast %52 : vector<2x32xf32> to vector<2x1x32xf32>
    %54 = vector.broadcast %53 : vector<2x1x32xf32> to vector<2x8x32xf32>
    %55 = arith.mulf %17, %54 : vector<2x8x32xf32>
    %cst_14 = arith.constant dense<0.000000e+00> : vector<2x8xf32>
    %56 = vector.multi_reduction <add>, %55, %cst_14 [2] : vector<2x8x32xf32> to vector<2x8xf32>
    %57 = vector.shape_cast %56 : vector<2x8xf32> to vector<2x8x1xf32>
    %cst_15 = arith.constant dense<0xFF800000> : vector<2x1xf32>
    %58 = vector.multi_reduction <maximumf>, %57, %cst_15 [1] : vector<2x8x1xf32> to vector<2x1xf32>
    %59 = vector.shape_cast %58 : vector<2x1xf32> to vector<2x1x1xf32>
    %60 = vector.broadcast %59 : vector<2x1x1xf32> to vector<2x8x1xf32>
    %61 = arith.cmpf oeq, %57, %60 : vector<2x8x1xf32>
    %cst_16 = arith.constant 8.000000e+00 : f32
    %62 = vector.broadcast %cst_16 : f32 to vector<2x8x1xf32>
    %63 = arith.select %61, %23, %62 : vector<2x8x1xi1>, vector<2x8x1xf32>
    %cst_17 = arith.constant dense<0x7F800000> : vector<2x1xf32>
    %64 = vector.multi_reduction <minimumf>, %63, %cst_17 [1] : vector<2x8x1xf32> to vector<2x1xf32>
    %65 = vector.shape_cast %64 : vector<2x1xf32> to vector<2x1x1xf32>
    %66 = vector.broadcast %65 : vector<2x1x1xf32> to vector<2x8x1xf32>
    %67 = arith.cmpf oeq, %23, %66 : vector<2x8x1xf32>
    %cst_18 = arith.constant 0.000000e+00 : f32
    %68 = vector.shape_cast %67 : vector<2x8x1xi1> to vector<2x8x1xi1>
    %69 = vector.broadcast %68 : vector<2x8x1xi1> to vector<2x8x64xi1>
    %70 = vector.broadcast %cst_18 : f32 to vector<2x8x64xf32>
    %71 = arith.select %69, %21, %70 : vector<2x8x64xi1>, vector<2x8x64xf32>
    %cst_19 = arith.constant dense<0.000000e+00> : vector<2x64xf32>
    %72 = vector.multi_reduction <add>, %71, %cst_19 [1] : vector<2x8x64xf32> to vector<2x64xf32>
    %73 = vector.extract_strided_slice %72 {offsets = [0, 0], sizes = [2, 32], strides = [1, 1]} : vector<2x64xf32> to vector<2x32xf32>
    %74 = vector.extract_strided_slice %72 {offsets = [0, 32], sizes = [2, 32], strides = [1, 1]} : vector<2x64xf32> to vector<2x32xf32>
    %75 = arith.addf %49, %74 : vector<2x32xf32>
    %cst_20 = arith.constant 0.333333343 : f32
    %76 = vector.broadcast %cst_20 : f32 to vector<2x32xf32>
    %77 = arith.mulf %75, %76 : vector<2x32xf32>
    %78 = math.tanh %77 : vector<2x32xf32>
    %79 = vector.shape_cast %78 : vector<2x32xf32> to vector<2x1x32xf32>
    %80 = vector.broadcast %79 : vector<2x1x32xf32> to vector<2x8x32xf32>
    %81 = arith.mulf %17, %80 : vector<2x8x32xf32>
    %cst_21 = arith.constant dense<0.000000e+00> : vector<2x8xf32>
    %82 = vector.multi_reduction <add>, %81, %cst_21 [2] : vector<2x8x32xf32> to vector<2x8xf32>
    %83 = vector.shape_cast %82 : vector<2x8xf32> to vector<2x8x1xf32>
    %cst_22 = arith.constant dense<0xFF800000> : vector<2x1xf32>
    %84 = vector.multi_reduction <maximumf>, %83, %cst_22 [1] : vector<2x8x1xf32> to vector<2x1xf32>
    %85 = vector.shape_cast %84 : vector<2x1xf32> to vector<2x1x1xf32>
    %86 = vector.broadcast %85 : vector<2x1x1xf32> to vector<2x8x1xf32>
    %87 = arith.cmpf oeq, %83, %86 : vector<2x8x1xf32>
    %cst_23 = arith.constant 8.000000e+00 : f32
    %88 = vector.broadcast %cst_23 : f32 to vector<2x8x1xf32>
    %89 = arith.select %87, %23, %88 : vector<2x8x1xi1>, vector<2x8x1xf32>
    %cst_24 = arith.constant dense<0x7F800000> : vector<2x1xf32>
    %90 = vector.multi_reduction <minimumf>, %89, %cst_24 [1] : vector<2x8x1xf32> to vector<2x1xf32>
    %91 = vector.shape_cast %90 : vector<2x1xf32> to vector<2x1x1xf32>
    %92 = vector.broadcast %91 : vector<2x1x1xf32> to vector<2x8x1xf32>
    %93 = arith.cmpf oeq, %23, %92 : vector<2x8x1xf32>
    %cst_25 = arith.constant 0.000000e+00 : f32
    %94 = vector.shape_cast %93 : vector<2x8x1xi1> to vector<2x8x1xi1>
    %95 = vector.broadcast %94 : vector<2x8x1xi1> to vector<2x8x64xi1>
    %96 = vector.broadcast %cst_25 : f32 to vector<2x8x64xf32>
    %97 = arith.select %95, %21, %96 : vector<2x8x64xi1>, vector<2x8x64xf32>
    %cst_26 = arith.constant dense<0.000000e+00> : vector<2x64xf32>
    %98 = vector.multi_reduction <add>, %97, %cst_26 [1] : vector<2x8x64xf32> to vector<2x64xf32>
    %99 = vector.extract_strided_slice %98 {offsets = [0, 0], sizes = [2, 32], strides = [1, 1]} : vector<2x64xf32> to vector<2x32xf32>
    %100 = tpu.concatenate %13, %47, %73, %99 in 1 : vector<2x32xf32>, vector<2x32xf32>, vector<2x32xf32>, vector<2x32xf32> -> vector<2x128xf32>
    %c0_27 = arith.constant 0 : index
    %c0_28 = arith.constant 0 : index
    %101 = vector.load %arg3[%c0_27, %c0_28] : memref<2x128xf32, #tpu.memory_space<vmem>>, vector<2x128xf32>
    tpu.vector_store %arg3[%c0_27, %c0_28], %100 {strides = array<i32>} : memref<2x128xf32, #tpu.memory_space<vmem>>, vector<2x128xf32>,
    return
  }
  func.func @transform_0(%arg0: i32) -> (i32, i32) {
    %c0_i32 = arith.constant 0 : i32
    %c0_i32_0 = arith.constant 0 : i32
    %c0_i32_1 = arith.constant 0 : i32
    return %c0_i32, %c0_i32_0 : i32, i32
  }
  func.func @transform_1(%arg0: i32) -> (i32, i32) {
    %c0_i32 = arith.constant 0 : i32
    %c0_i32_0 = arith.constant 0 : i32
    %c0_i32_1 = arith.constant 0 : i32
    return %c0_i32, %c0_i32_0 : i32, i32
  }
  func.func @transform_2(%arg0: i32) -> (i32, i32) {
    %c0_i32 = arith.constant 0 : i32
    %c0_i32_0 = arith.constant 0 : i32
    %c0_i32_1 = arith.constant 0 : i32
    return %c0_i32, %c0_i32_0 : i32, i32
  }
}

</mosaic_0001>

<bundles_post_ra>
// kernel: tpu_custom_call.1
= control target key start
LH: loop header
LB: loop body
LE: loop exit
PB: predicated region body
PF: predicated region fallthrough
CT: control target
= control target key end

     0   :  { %v649_v1 = vmov 0.0   ;;  %vm650_vm0 = vmmov 0   ;;  %s826_s0 = inlined_call_operand.vmem [shape: f32[24,32], index: 0, kind: input, shape index: {}]   ;;  %s827_s1 = inlined_call_operand.vmem [shape: f32[72,64], index: 1, kind: input, shape index: {}]   ;;  %s828_s2 = inlined_call_operand.hbm [shape: f32[2,128], index: 2, kind: output, shape index: {}]  }
   0x1   :  { %v18_v0 = vld [vmem:[%s827_s1 + $0x18] sm:$0xff]  ;;  %576 = vmatprep.subr.mxu0 %v649_v1  ;;  %v17_v2 = vld [vmem:[%s827_s1 + $0x10] sm:$0xff]  ;;  %584 = vmatprep.mubr.msk.f32.mxu0 %vm650_vm0, %v649_v1  ;;  %v23_v3 = vld [vmem:[%s827_s1 + $0x40] sm:$0xff] }
   0x2   :  { %577 = vmatpush3.msra.mxu0 %v18_v0  ;;  %593 = vmatprep.subr.mxu1 %v649_v1  ;;  %v22_v4 = vld [vmem:[%s827_s1 + $0x38] sm:$0xff]  ;;  %v16_v5 = vld [vmem:[%s827_s1 + $0x8] sm:$0xff] }
   0x3   :  { %578 = vmatprep.subr.mxu0 %v649_v1  ;;  %594 = vmatpush3.msra.mxu1 %v23_v3 }
   0x4   :  { %7 = vsyncpa [#allocation3], 0  ;;  %579 = vmatpush3.msra.mxu0 %v17_v2  ;;  %595 = vmatprep.subr.mxu1 %v649_v1  ;;  %v21_v6 = vld [vmem:[%s827_s1 + $0x30] sm:$0xff]  ;;  %v15_v7 = vld [vmem:[%s827_s1] sm:$0xff]  ;;  %vm28_vm1 = vcmask 261120   ;;  %v118_v19 = vlaneseq  ;;  %vm304_vm4 = vcmask 523264  }
   0x5   :  { %580 = vmatprep.subr.mxu0 %v649_v1  ;;  %596 = vmatpush3.msra.mxu1 %v22_v4  ;;  %v696_v8 = vld [vmem:[%s826_s0] sm:$0xff]  ;;  %v20_v9 = vld [vmem:[%s827_s1 + $0x28] sm:$0xff]  ;;  %v14_v11 = vld [vmem:[%s826_s0 + $0x10] sm:$0xff]  ;;  %v651_v20 = vmov 1966171168   ;;  %vm321_vm7 = vcmask 1041409  }
   0x6   :  { %581 = vmatpush3.msra.mxu0 %v16_v5  ;;  %597 = vmatprep.subr.mxu1 %v649_v1  ;;  %v13_v10 = vld [vmem:[%s826_s0 + $0x8] sm:$0xff]  ;;  %v555_v14 = vld [vmem:[%s827_s1 + $0x20] ss:$0 sm:$0xff]  ;;  %v225_v21 = vunpack.c.l.s4 %v651_v20  ;;  %v119_v25 = vshrl.u32 %v118_v19, 7  ;;  %s652_s0 = smov 96   ;;  %s653_s1 = smov 64  }
   0x7   :  { %582 = vmatprep.subr.mxu0 %v649_v1  ;;  %598 = vmatpush3.msra.mxu1 %v21_v6  ;;  %s654_s5 = smov 32   ;;  %s655_s6 = smov [#allocation2]  }
   0x8   :  { %583 = vmatpush3.msra.mxu0 %v15_v7  ;;  %599 = vmatprep.subr.mxu1 %v649_v1  ;;  %v226_v26 = vunpack.c.0.s8 %v225_v21  ;;  %v735_v31 = vsub.s32 0, %v119_v25  ;;  %v751_v59 = vcvt.s32.f32 %v119_v25  ;;  %s547_s7 = sshll.u32 %s655_s6, 4  ;;  %s548_s7 = int_to_ptr.vmem [resolvable:$true] %s547_s7 }
   0x9   :  { %585 = vmatmul.mubr.msk.f32.vlgmr.msra.gmra.mxu0 %vm28_vm1, %v696_v8  ;;  %600 = vmatpush3.msra.mxu1 %v20_v9  ;;  %s627_s8 = scalar_lea.vmem %s548_s7, 32  ;;  %p632_p1 = scmp.lt.s32.totalorder %s548_s7, %s548_s7 }
   0xa   :  { %587 = vmatprep.mubr.msk.f32.mxu0 %vm650_vm0, %v649_v1  ;;  %601 = vmatprep.mubr.msk.f32.mxu1 %vm650_vm0, %v649_v1  ;;  %v732_v28 = vsub.s32 %v226_v26, %v119_v25  ;;  %p628_p0 = scmp.ne.s32.totalorder %s548_s7, %s627_s8  ;;  %p633_p2 = scmp.lt.s32.totalorder %s627_s8, %s627_s8 }
   0xb   :  { %602 = vmatmul.mubr.msk.f32.vlgmr.msra.gmra.mxu1 %vm28_vm1, %v696_v8 }
   0xc   :  { %604 = vmatprep.mubr.msk.f32.mxu1 %vm650_vm0, %v649_v1  ;;  %p634_p3 = por %p633_p2, %p632_p1 }
   0xd   :  { %588 = vmatmul.mubr.msk.f32.gmra.mxu0 %vm28_vm1, %v13_v10 }
   0xe   :  { %590 = vmatprep.mubr.msk.f32.mxu0 %vm650_vm0, %v649_v1  ;;  %p635_p4 = pnand %p634_p3, %p628_p0 }
  0x11   :  { %591 = vmatmul.mubr.msk.f32.gmra.mxu0 %vm28_vm1, %v14_v11 }
  0xc9   :  { %v104_v12 = vpop.f32.mrf.mxu0 }
  0xcb   :  { %v586_v13 = vpop.f32.mrf.mxu0  ;;  %v720_v15 = vpop.f32.mrf.mxu1 }
  0xcc   :  { %617 = vtanh.f32 %v720_v15 }
  0xcd   :  { %v109_v16 = vpop.f32.mrf.mxu0  ;;  %v603_v17 = vpop.f32.mrf.mxu1 }
  0xce   :  { %v723_v18 = vadd.f32 %v555_v14, %v109_v16 }
  0xcf   :  { %v589_v22 = vpop.f32.mrf.mxu0 }
  0xd0   :  { %605 = vmatmul.mubr.msk.f32.gmra.mxu1 %vm28_vm1, %v723_v18 }
  0xd1   :  { %v114_v23 = vpop.f32.mrf.mxu0  ;;  %607 = vmatprep.mubr.msk.f32.mxu1 %vm650_vm0, %v649_v1  ;;  %vm538_vm0 = vcmask 785408  }
  0xd2   :  { %v728_v24 = vadd.f32 %v555_v14, %v114_v23 }
  0xd3   :  { %v592_v27 = vpop.f32.mrf.mxu0 }
  0xd4   :  { %608 = vmatmul.mubr.msk.f32.gmra.mxu1 %vm28_vm1, %v728_v24 }
  0xd9   :  { %v618_v29 = vpop.eup %617 }
  0xda   :  { %v230_v30 = vrot.slane %v618_v29, %v732_v28 }
  0xdc   :  { %v238_v32 = vrot.slane %v230_v30, %v732_v28  ;;  %v231_v33 = vcombine.high %v230_v30, %v230_v30 }
  0xde   :  { %v249_v34 = vrot.slane %v238_v32, %v735_v31  ;;  %v245_v35 = vrot.slane %v231_v33, %v732_v28 }
  0xe0   :  { %254 = vrot.lane.b32.xlu0 %v249_v34, %s652_s0  ;;  %v253_v36 = vrot.slane %v245_v35, %v735_v31 }
  0xe4   :  { %256 = vrot.lane.b32.xlu0 %v253_v36, %s652_s0 }
 0x152   :  { %v255_v41 = vpop.permute.xlu0 %254 }
 0x156   :  { %v257_v46 = vpop.permute.xlu0 %256 }
 0x190   :  { %v208_v37 = vpop.f32.mrf.mxu1 }
 0x191   :  { %619 = vtanh.f32 %v208_v37  ;;  %v757_v13 = vsel %vm28_vm1, %v723_v18, %v208_v37 }
 0x192   :  { %v606_v38 = vpop.f32.mrf.mxu1 }
 0x194   :  { %v213_v39 = vpop.f32.mrf.mxu1 }
 0x195   :  { %621 = vtanh.f32 %v213_v39  ;;  %v764_v21 = vsel %vm28_vm1, %v728_v24, %v213_v39 }
 0x196   :  { %v609_v40 = vpop.f32.mrf.mxu1 }
 0x19e   :  { %v743_v42 = vpop.eup %619 }
 0x19f   :  { %v260_v43 = vmul.f32 %v743_v42, %v255_v41 }
 0x1a1   :  { %v262_v44 = vsel %vm28_vm1, %v260_v43, 0.0 }
 0x1a2   :  { %v747_v45 = vpop.eup %621  ;;  %263 = vadd.xlane.f32.xlu1 %v262_v44 }
 0x1a3   :  { %v261_v47 = vmul.f32 %v747_v45, %v257_v46 }
 0x1a5   :  { %v265_v48 = vsel %vm28_vm1, %v261_v47, 0.0 }
 0x1a6   :  { %266 = vadd.xlane.f32.xlu1 %v265_v48 }
 0x22b   :  { %v264_v49 = vpop.xlane.xlu1 %263 }
 0x22c   :  { %v268_v50 = vrot.slane %v264_v49, 4 }
 0x22e   :  { %v269_v51 = vmax.f32 %v264_v49, %v268_v50 }
 0x22f   :  { %v267_v52 = vpop.xlane.xlu1 %266 }
 0x230   :  { %v270_v53 = vrot.slane %v269_v51, 2  ;;  %v274_v54 = vrot.slane %v267_v52, 4 }
 0x232   :  { %v271_v55 = vmax.f32 %v269_v51, %v270_v53  ;;  %v275_v56 = vmax.f32 %v267_v52, %v274_v54 }
 0x234   :  { %v272_v57 = vrot.slane %v271_v55, 1  ;;  %v276_v58 = vrot.slane %v275_v56, 2 }
 0x236   :  { %v273_v60 = vmax.f32 %v271_v55, %v272_v57  ;;  %v277_v61 = vmax.f32 %v275_v56, %v276_v58 }
 0x238   :  { %vm280_vm2 = vcmp.eq.f32.partialorder %v264_v49, %v273_v60  ;;  %v278_v62 = vrot.slane %v277_v61, 1 }
 0x239   :  { %v282_v63 = vsel %vm280_vm2, %v751_v59, 8.0 }
 0x23a   :  { %v284_v0 = vrot.slane %v282_v63, 4  ;;  %v279_v1 = vmax.f32 %v277_v61, %v278_v62 }
 0x23c   :  { %v285_v2 = vmin.f32 %v282_v63, %v284_v0  ;;  %vm281_vm3 = vcmp.eq.f32.partialorder %v267_v52, %v279_v1 }
 0x23d   :  { %v283_v3 = vsel %vm281_vm3, %v751_v59, 8.0 }
 0x23e   :  { %v286_v4 = vrot.slane %v285_v2, 2  ;;  %v290_v5 = vrot.slane %v283_v3, 4 }
 0x240   :  { %v287_v6 = vmin.f32 %v285_v2, %v286_v4  ;;  %v291_v7 = vmin.f32 %v283_v3, %v290_v5 }
 0x242   :  { %v288_v9 = vrot.slane %v287_v6, 1  ;;  %v292_v10 = vrot.slane %v291_v7, 2 }
 0x244   :  { %v289_v11 = vmin.f32 %v287_v6, %v288_v9  ;;  %v293_v12 = vmin.f32 %v291_v7, %v292_v10 }
 0x246   :  { %vm296_vm5 = vcmp.eq.f32.partialorder %v751_v59, %v289_v11  ;;  %v294_v14 = vrot.slane %v293_v12, 1 }
 0x247   :  { %v302_v16 = vsel %vm296_vm5, %v757_v13, 0.0 }
 0x248   :  { %v305_v17 = vsel %vm304_vm4, %v302_v16, 0.0  ;;  %v295_v19 = vmin.f32 %v293_v12, %v294_v14 }
 0x249   :  { %v306_v20 = vrot.slane %v305_v17, 4 }
 0x24a   :  { %vm297_vm6 = vcmp.eq.f32.partialorder %v751_v59, %v295_v19 }
 0x24b   :  { %v307_v22 = vadd.f32 %v306_v20, %v305_v17  ;;  %v303_v23 = vsel %vm297_vm6, %v764_v21, 0.0 }
 0x24c   :  { %v312_v18 = vsel %vm304_vm4, %v303_v23, 0.0 }
 0x24d   :  { %v308_v25 = vrot.slane %v307_v22, 2  ;;  %v313_v26 = vrot.slane %v312_v18, 4 }
 0x24f   :  { %v309_v27 = vadd.f32 %v308_v25, %v307_v22  ;;  %v314_v29 = vadd.f32 %v313_v26, %v312_v18 }
 0x251   :  { %v315_v30 = vrot.slane %v314_v29, 2  ;;  %v310_v32 = vrot.slane %v309_v27, 1 }
 0x253   :  { %v316_v33 = vadd.f32 %v315_v30, %v314_v29  ;;  %v311_v35 = vadd.f32 %v310_v32, %v309_v27 }
 0x255   :  { %v317_v34 = vrot.slane %v316_v33, 1 }
 0x257   :  { %v318_v36 = vadd.f32 %v317_v34, %v316_v33 }
 0x259   :  { %v770_v24 = vsel %vm321_vm7, %v318_v36, %v311_v35 }
 0x25a   :  { %v774_v37 = vadd.f32 %v770_v24, %v720_v15 }
 0x25c   :  { %v325_v38 = vmul.f32 0.5, %v774_v37 }
 0x25e   :  { %623 = vtanh.f32 %v325_v38 }
 0x26b   :  { %v624_v39 = vpop.eup %623 }
 0x26c   :  { %v334_v40 = vrot.slane %v624_v39, %v732_v28 }
 0x26e   :  { %v342_v41 = vrot.slane %v334_v40, %v732_v28  ;;  %v335_v43 = vcombine.high %v334_v40, %v334_v40 }
 0x270   :  { %v353_v44 = vrot.slane %v342_v41, %v735_v31  ;;  %v349_v46 = vrot.slane %v335_v43, %v732_v28 }
 0x272   :  { %358 = vrot.lane.b32.xlu0 %v353_v44, %s652_s0  ;;  %v357_v47 = vrot.slane %v349_v46, %v735_v31 }
 0x274   :  { %360 = vrot.lane.b32.xlu1 %v357_v47, %s652_s0 }
 0x2e4   :  { %v359_v15 = vpop.permute.xlu0 %358 }
 0x2e5   :  { %v364_v48 = vmul.f32 %v743_v42, %v359_v15 }
 0x2e6   :  { %v361_v49 = vpop.permute.xlu1 %360 }
 0x2e7   :  { %v365_v50 = vmul.f32 %v747_v45, %v361_v49  ;;  %v366_v51 = vsel %vm28_vm1, %v364_v48, 0.0 }
 0x2e8   :  { %367 = vadd.xlane.f32.xlu0 %v366_v51 }
 0x2e9   :  { %v369_v52 = vsel %vm28_vm1, %v365_v50, 0.0 }
 0x2ea   :  { %370 = vadd.xlane.f32.xlu1 %v369_v52 }
 0x371   :  { %v368_v53 = vpop.xlane.xlu0 %367 }
 0x372   :  { %v372_v54 = vrot.slane %v368_v53, 4 }
 0x373   :  { %v371_v55 = vpop.xlane.xlu1 %370 }
 0x374   :  { %v373_v56 = vmax.f32 %v368_v53, %v372_v54  ;;  %v378_v57 = vrot.slane %v371_v55, 4 }
 0x376   :  { %v374_v58 = vrot.slane %v373_v56, 2  ;;  %v379_v60 = vmax.f32 %v371_v55, %v378_v57 }
 0x378   :  { %v375_v61 = vmax.f32 %v373_v56, %v374_v58  ;;  %v380_v62 = vrot.slane %v379_v60, 2 }
 0x37a   :  { %v376_v63 = vrot.slane %v375_v61, 1  ;;  %v381_v0 = vmax.f32 %v379_v60, %v380_v62 }
 0x37c   :  { %v377_v1 = vmax.f32 %v375_v61, %v376_v63  ;;  %v382_v2 = vrot.slane %v381_v0, 1 }
 0x37e   :  { %vm384_vm8 = vcmp.eq.f32.partialorder %v368_v53, %v377_v1  ;;  %v383_v3 = vmax.f32 %v381_v0, %v382_v2 }
 0x37f   :  { %v386_v4 = vsel %vm384_vm8, %v751_v59, 8.0 }
 0x380   :  { %v388_v5 = vrot.slane %v386_v4, 4  ;;  %vm385_vm9 = vcmp.eq.f32.partialorder %v371_v55, %v383_v3 }
 0x381   :  { %v387_v6 = vsel %vm385_vm9, %v751_v59, 8.0 }
 0x382   :  { %v389_v7 = vmin.f32 %v386_v4, %v388_v5  ;;  %v394_v9 = vrot.slane %v387_v6, 4 }
 0x384   :  { %v390_v10 = vrot.slane %v389_v7, 2  ;;  %v395_v11 = vmin.f32 %v387_v6, %v394_v9 }
 0x386   :  { %v391_v12 = vmin.f32 %v389_v7, %v390_v10  ;;  %v396_v14 = vrot.slane %v395_v11, 2 }
 0x388   :  { %v392_v16 = vrot.slane %v391_v12, 1  ;;  %v397_v17 = vmin.f32 %v395_v11, %v396_v14 }
 0x38a   :  { %v393_v19 = vmin.f32 %v391_v12, %v392_v16  ;;  %v398_v20 = vrot.slane %v397_v17, 1 }
 0x38c   :  { %vm400_vm10 = vcmp.eq.f32.partialorder %v751_v59, %v393_v19  ;;  %v399_v22 = vmin.f32 %v397_v17, %v398_v20 }
 0x38d   :  { %v406_v23 = vsel %vm400_vm10, %v757_v13, 0.0 }
 0x38e   :  { %v408_v18 = vsel %vm304_vm4, %v406_v23, 0.0  ;;  %vm401_vm11 = vcmp.eq.f32.partialorder %v751_v59, %v399_v22 }
 0x38f   :  { %v409_v25 = vrot.slane %v408_v18, 4  ;;  %v407_v26 = vsel %vm401_vm11, %v764_v21, 0.0 }
 0x390   :  { %v415_v27 = vsel %vm304_vm4, %v407_v26, 0.0 }
 0x391   :  { %v410_v29 = vadd.f32 %v409_v25, %v408_v18  ;;  %v416_v30 = vrot.slane %v415_v27, 4 }
 0x393   :  { %v411_v32 = vrot.slane %v410_v29, 2  ;;  %v417_v33 = vadd.f32 %v416_v30, %v415_v27 }
 0x395   :  { %v412_v34 = vadd.f32 %v411_v32, %v410_v29  ;;  %v418_v35 = vrot.slane %v417_v33, 2 }
 0x397   :  { %v413_v36 = vrot.slane %v412_v34, 1  ;;  %v419_v38 = vadd.f32 %v418_v35, %v417_v33 }
 0x399   :  { %v420_v39 = vrot.slane %v419_v38, 1  ;;  %v414_v40 = vadd.f32 %v413_v36, %v412_v34 }
 0x39b   :  { %v421_v41 = vadd.f32 %v420_v39, %v419_v38 }
 0x39d   :  { %v424_v43 = vsel %vm321_vm7, %v421_v41, %v414_v40 }
 0x39e   :  { %v426_v44 = vadd.f32 %v424_v43, %v774_v37 }
 0x3a0   :  { %v427_v46 = vmul.f32 0.33333334, %v426_v44 }
 0x3a2   :  { %625 = vtanh.f32 %v427_v46 }
 0x3af   :  { %v626_v47 = vpop.eup %625 }
 0x3b0   :  { %v436_v15 = vrot.slane %v626_v47, %v732_v28 }
 0x3b2   :  { %v444_v48 = vrot.slane %v436_v15, %v732_v28  ;;  %v437_v49 = vcombine.high %v436_v15, %v436_v15 }
 0x3b4   :  { %v455_v50 = vrot.slane %v444_v48, %v735_v31  ;;  %v451_v51 = vrot.slane %v437_v49, %v732_v28 }
 0x3b6   :  { %460 = vrot.lane.b32.xlu0 %v455_v50, %s652_s0  ;;  %v459_v52 = vrot.slane %v451_v51, %v735_v31 }
 0x3b8   :  { %462 = vrot.lane.b32.xlu1 %v459_v52, %s652_s0 }
 0x428   :  { %v461_v53 = vpop.permute.xlu0 %460 }
 0x429   :  { %v466_v37 = vmul.f32 %v743_v42, %v461_v53 }
 0x42a   :  { %v463_v54 = vpop.permute.xlu1 %462 }
 0x42b   :  { %v467_v55 = vmul.f32 %v747_v45, %v463_v54  ;;  %v468_v56 = vsel %vm28_vm1, %v466_v37, 0.0 }
 0x42c   :  { %469 = vadd.xlane.f32.xlu0 %v468_v56 }
 0x42d   :  { %v471_v57 = vsel %vm28_vm1, %v467_v55, 0.0 }
 0x42e   :  { %472 = vadd.xlane.f32.xlu1 %v471_v57 }
 0x43f   :  { %527 = vrot.lane.b32.xlu1 %v424_v43, %s653_s1 }
 0x442   :  { %524 = vrot.lane.b32.xlu0 %v770_v24, %s654_s5 }
 0x4b5   :  { %v470_v28 = vpop.xlane.xlu0 %469 }
 0x4b6   :  { %v474_v31 = vrot.slane %v470_v28, 4 }
 0x4b7   :  { %v473_v58 = vpop.xlane.xlu1 %472 }
 0x4b8   :  { %v475_v60 = vmax.f32 %v470_v28, %v474_v31  ;;  %v480_v61 = vrot.slane %v473_v58, 4 }
 0x4b9   :  { %v525_v41 = vpop.permute.xlu0 %524 }
 0x4ba   :  { %v476_v42 = vrot.slane %v475_v60, 2  ;;  %v481_v62 = vmax.f32 %v473_v58, %v480_v61 }
 0x4bb   :  { %v528_v43 = vpop.permute.xlu1 %527 }
 0x4bc   :  { %v477_v63 = vmax.f32 %v475_v60, %v476_v42  ;;  %v482_v45 = vrot.slane %v481_v62, 2 }
 0x4be   :  { %v478_v0 = vrot.slane %v477_v63, 1  ;;  %v483_v1 = vmax.f32 %v481_v62, %v482_v45 }
 0x4c0   :  { %v479_v2 = vmax.f32 %v477_v63, %v478_v0  ;;  %v484_v3 = vrot.slane %v483_v1, 1 }
 0x4c2   :  { %vm486_vm12 = vcmp.eq.f32.partialorder %v470_v28, %v479_v2  ;;  %v485_v4 = vmax.f32 %v483_v1, %v484_v3 }
 0x4c3   :  { %v488_v5 = vsel %vm486_vm12, %v751_v59, 8.0 }
 0x4c4   :  { %v490_v6 = vrot.slane %v488_v5, 4  ;;  %vm487_vm13 = vcmp.eq.f32.partialorder %v473_v58, %v485_v4 }
 0x4c5   :  { %v489_v24 = vsel %vm487_vm13, %v751_v59, 8.0 }
 0x4c6   :  { %v491_v7 = vmin.f32 %v488_v5, %v490_v6  ;;  %v496_v9 = vrot.slane %v489_v24, 4 }
 0x4c8   :  { %v492_v10 = vrot.slane %v491_v7, 2  ;;  %v497_v11 = vmin.f32 %v489_v24, %v496_v9 }
 0x4ca   :  { %v493_v12 = vmin.f32 %v491_v7, %v492_v10  ;;  %v498_v14 = vrot.slane %v497_v11, 2 }
 0x4cc   :  { %v494_v16 = vrot.slane %v493_v12, 1  ;;  %v499_v17 = vmin.f32 %v497_v11, %v498_v14 }
 0x4ce   :  { %v495_v19 = vmin.f32 %v493_v12, %v494_v16  ;;  %v500_v20 = vrot.slane %v499_v17, 1 }
 0x4d0   :  { %vm502_vm14 = vcmp.eq.f32.partialorder %v751_v59, %v495_v19  ;;  %v501_v22 = vmin.f32 %v499_v17, %v500_v20 }
 0x4d1   :  { %v508_v23 = vsel %vm502_vm14, %v757_v13, 0.0 }
 0x4d2   :  { %vm503_vm15 = vcmp.eq.f32.partialorder %v751_v59, %v501_v22  ;;  %v510_v18 = vsel %vm304_vm4, %v508_v23, 0.0 }
 0x4d3   :  { %v509_v25 = vsel %vm503_vm15, %v764_v21, 0.0  ;;  %v511_v26 = vrot.slane %v510_v18, 4  ;;  %v536_v21 = vsel %vm28_vm1, %v696_v8, %v525_v41 }
 0x4d4   :  { %v517_v27 = vsel %vm304_vm4, %v509_v25, 0.0  ;;  %v537_v44 = vsel %vm304_vm4, %v536_v21, %v528_v43 }
 0x4d5   :  { %v512_v29 = vadd.f32 %v511_v26, %v510_v18  ;;  %v518_v30 = vrot.slane %v517_v27, 4 }
 0x4d7   :  { %v513_v32 = vrot.slane %v512_v29, 2  ;;  %v519_v33 = vadd.f32 %v518_v30, %v517_v27 }
 0x4d9   :  { %v514_v34 = vadd.f32 %v513_v32, %v512_v29  ;;  %v520_v35 = vrot.slane %v519_v33, 2 }
 0x4db   :  { %v515_v36 = vrot.slane %v514_v34, 1  ;;  %v521_v38 = vadd.f32 %v520_v35, %v519_v33 }
 0x4dd   :  { %v522_v39 = vrot.slane %v521_v38, 1  ;;  %v516_v40 = vadd.f32 %v515_v36, %v514_v34 }
 0x4df   :  { %v523_v13 = vadd.f32 %v522_v39, %v521_v38 }
 0x4e1   :  { %v532_v59 = vsel %vm321_vm7, %v523_v13, %v516_v40 }
 0x4e2   :  { %533 = vrot.lane.b32.xlu0 %v532_v59, %s652_s0 }
 0x554   :  { %v534_v46 = vpop.permute.xlu0 %533 }
 0x555   :  { %v539_v47 = vsel %vm538_vm0, %v537_v44, %v534_v46 }
 0x556   :  { %540 = vst [vmem:[#allocation2] sm:$0x3] %v539_v47 }
 0x557   :  { %638 = shalt.err (!%p635_p4)
}
 0x558   :  { %550 = dma.vmem_to_hbm [thread:$0]  %s548_s7, 32, %s828_s2, [#allocation3]  }
 0x559   :  { %647 = dma.done.wait [#allocation3], 32  }
 0x55a   :  { %648 = vsyncadd [#allocation3], 4294967264 }
 0x55b   :  { %554 = vsyncpa [#allocation3], 1 }

</bundles_post_ra>
